<compile_context>
chip_gen: v7x
topology: tpu7x:2x2x1
jax: 0.10.0
libtpu: 0.0.40
codegen_flags: <defaults>
</compile_context>

<pallas_src>
import functools

import jax
import jax.numpy as jnp
from jax.experimental import pallas as pl
from jax.experimental.pallas import tpu as pltpu


def _focal_loss_kernel(logits_ref, targets_ref, at_ref, out_ref,
                       ce_acc, at_acc, *, gamma, n, tile_n):
    i = pl.program_id(0)

    @pl.when(i == 0)
    def _init():
        ce_acc[...] = jnp.zeros_like(ce_acc)
        at_acc[...] = jnp.zeros_like(at_acc)

    logits = logits_ref[...].astype(jnp.float32)           # (tile_n, C), cast in-kernel
    tgt = targets_ref[...]                                  # (tile_n, 1) int32
    at = at_ref[...].astype(jnp.float32)                    # (tile_n, 1) alpha[target]

    # validity mask for the ragged last tile (padded rows must not enter the sums)
    row = jax.lax.broadcasted_iota(jnp.int32, (tile_n, 1), 0)
    valid = (i * tile_n + row) < n                          # (tile_n, 1) bool

    # logits[target] via a lane-iota select (no materialized one-hot f32 tensor)
    col = jax.lax.broadcasted_iota(jnp.int32, logits.shape, 1)          # (tile_n, C)
    picked = jnp.sum(jnp.where(col == tgt, logits, 0.0),
                     axis=-1, keepdims=True)                            # (tile_n, 1)

    # per-sample cross entropy: logsumexp(logits) - logits[target]
    m = jnp.max(logits, axis=-1, keepdims=True)
    lse = m + jnp.log(jnp.sum(jnp.exp(logits - m), axis=-1, keepdims=True))
    ce_per = lse - picked                                               # (tile_n, 1)

    ce_per = jnp.where(valid, ce_per, 0.0)
    at = jnp.where(valid, at, 0.0)

    ce_acc[...] += jnp.sum(ce_per, axis=0, keepdims=True)               # (1, 1)
    at_acc[...] += jnp.sum(at, axis=0, keepdims=True)                   # (1, 1)

    @pl.when(i == pl.num_programs(0) - 1)
    def _finalize():
        inv_n = jnp.float32(1.0 / n)
        ce_mean = ce_acc[...] * inv_n       # scalar CE_loss (mean reduction)
        at_mean = at_acc[...] * inv_n       # mean(alpha[target])
        pt = jnp.exp(-ce_mean)
        omp = 1.0 - pt
        if float(gamma).is_integer() and 0 <= int(gamma) <= 4:
            focal = jnp.ones_like(omp)
            for _ in range(int(gamma)):     # static unroll; avoids EUP pow (log+exp)
                focal = focal * omp
        else:
            focal = omp ** jnp.float32(gamma)
        # F_loss = at*(1-pt)^g*CE ; mean over N collapses to at_mean*(...)*CE
        out_ref[...] = (at_mean * focal * ce_mean).astype(out_ref.dtype)


def _choose_tile_n(n, c, itemsize):
    # Keep 2x double-buffered logits tiles under ~32 MiB -> safe on v7x (64 MiB VMEM/TC)
    # and comfortable on v5e/v6e (128 MiB). Bigger tiles amortize the ~0.35us/step cost.
    budget = 32 * 1024 * 1024
    max_rows = budget // max(1, 2 * c * itemsize)
    max_rows = max(8, (max_rows // 8) * 8)
    max_rows = min(max_rows, 8192)
    if n <= max_rows:
        return n            # full-extent block is always a legal block shape
    return max_rows         # multiple of 8 -> legal sublane tiling; last tile is masked


def weighted_focal_loss(inputs, targets, alpha, gamma=2.0, tile_rows=None):
    """inputs: (N, C) logits (native dtype), targets: (N,) int labels, alpha: (C,)."""
    n, c = inputs.shape
    tgt2d = targets.astype(jnp.int32).reshape(n, 1)
    # O(N) gather in the wrapper keeps alpha out of the (N, C) hot path in the kernel.
    at2d = alpha.astype(jnp.float32)[targets.astype(jnp.int32)].reshape(n, 1)

    itemsize = jnp.dtype(inputs.dtype).itemsize
    if tile_rows is not None:
        tile_n = min(int(tile_rows), n)
        if tile_n < n:
            tile_n = max(8, (tile_n // 8) * 8)   # keep user tile a legal sublane multiple
    else:
        tile_n = _choose_tile_n(n, c, itemsize)
    grid_n = pl.cdiv(n, tile_n)

    # vmem limit derived from the actual double-buffered tile footprint (+ slack),
    # capped at 48 MiB so it stays legal on v7x while still allowing big tiles elsewhere.
    tile_bytes = tile_n * (c * itemsize + 4 + 4)
    vmem_limit = int(min(max(2 * tile_bytes + (4 << 20), 16 << 20), 48 << 20))

    out = pl.pallas_call(
        functools.partial(_focal_loss_kernel, gamma=float(gamma), n=n, tile_n=tile_n),
        out_shape=jax.ShapeDtypeStruct((1, 1), jnp.float32),
        grid=(grid_n,),
        in_specs=[
            pl.BlockSpec((tile_n, c), lambda i: (i, 0)),
            pl.BlockSpec((tile_n, 1), lambda i: (i, 0)),
            pl.BlockSpec((tile_n, 1), lambda i: (i, 0)),
        ],
        out_specs=pl.BlockSpec((1, 1), lambda i: (0, 0)),
        scratch_shapes=[
            pltpu.VMEM((1, 1), jnp.float32),   # running sum of per-sample CE
            pltpu.VMEM((1, 1), jnp.float32),   # running sum of alpha[target]
        ],
        compiler_params=pltpu.CompilerParams(
            dimension_semantics=("arbitrary",),   # streaming reduction over N
            vmem_limit_bytes=vmem_limit,
        ),
    )(inputs, tgt2d, at2d)
    return out[0, 0]


def _reference(inputs, targets, alpha, gamma=2.0):
    # pure-JAX reference mirroring the PyTorch module
    logits = inputs.astype(jnp.float32)
    lse = jax.scipy.special.logsumexp(logits, axis=-1)
    picked = jnp.take_along_axis(logits, targets[:, None].astype(jnp.int32), axis=-1)[:, 0]
    ce = jnp.mean(lse - picked)                       # CrossEntropyLoss (mean reduction)
    at = alpha[targets.astype(jnp.int32)]             # alpha.gather(0, targets)
    pt = jnp.exp(-ce)
    return jnp.mean(at * (1.0 - pt) ** gamma * ce)


if __name__ == "__main__":
    key = jax.random.PRNGKey(0)
    k1, k2, k3, k4 = jax.random.split(key, 4)
    gamma = 2.0
    alpha = jnp.array([0.25, 0.5, 0.75, 1.0], dtype=jnp.float32)  # deterministic class weights

    # Test 1: tiny single-tile case (matches module-scale shapes).
    N, C = 8, 4
    inputs = jax.random.normal(k1, (N, C), dtype=jnp.float32)
    targets = jax.random.randint(k2, (N,), 0, C, dtype=jnp.int32)
    loss = jax.block_until_ready(weighted_focal_loss(inputs, targets, alpha, gamma))
    ref = _reference(inputs, targets, alpha, gamma)
    assert jnp.allclose(loss, ref, rtol=1e-5, atol=1e-6), (loss, ref)

    # Test 2: multi-tile path with a ragged (masked) last tile (forced small tile).
    N2, C2 = 40, 4
    inputs2 = jax.random.normal(k3, (N2, C2), dtype=jnp.float32)
    targets2 = jax.random.randint(k4, (N2,), 0, C2, dtype=jnp.int32)
    loss2 = jax.block_until_ready(
        weighted_focal_loss(inputs2, targets2, alpha, gamma, tile_rows=16))
    ref2 = _reference(inputs2, targets2, alpha, gamma)
    assert jnp.allclose(loss2, ref2, rtol=1e-5, atol=1e-6), (loss2, ref2)

    print("KERNEL_OK")
</pallas_src>

<mosaic_0001>
module attributes {stable_mosaic.version = 11 : i64} {
  func.func @_focal_loss_kernel(%arg0: i32, %arg1: memref<8x4xf32, #tpu.memory_space<vmem>>, %arg2: memref<8x1xi32, #tpu.memory_space<vmem>>, %arg3: memref<8x1xf32, #tpu.memory_space<vmem>>, %arg4: memref<1x1xf32, #tpu.memory_space<vmem>>, %arg5: memref<1x1xf32, #tpu.memory_space<vmem>>, %arg6: memref<1x1xf32, #tpu.memory_space<vmem>>) attributes {dimension_semantics = [#tpu.dimension_semantics<arbitrary>], iteration_bounds = array<i64: 1>, scalar_prefetch = 0 : i64, scratch_operands = 2 : i64, tpu.core_type = #tpu.core_type<tc>, window_params = [{transform_indices = @transform_0, window_bounds = array<i64: 8, 4>}, {transform_indices = @transform_1, window_bounds = array<i64: 8, 1>}, {transform_indices = @transform_2, window_bounds = array<i64: 8, 1>}, {pipeline_mode = #tpu.pipeline_mode<synchronous>, transform_indices = @transform_3, window_bounds = array<i64: 1, 1>}]} {
    %c0_i32 = arith.constant 0 : i32
    %0 = arith.cmpi eq, %arg0, %c0_i32 : i32
    %1 = arith.extui %0 : i1 to i32
    %c0_i32_0 = arith.constant 0 : i32
    %2 = arith.cmpi ne, %1, %c0_i32_0 : i32
    scf.if %2 {
      %cst_24 = arith.constant 0.000000e+00 : f32
      %46 = vector.broadcast %cst_24 : f32 to vector<1x1xf32>
      %c0_25 = arith.constant 0 : index
      %c0_26 = arith.constant 0 : index
      %47 = vector.load %arg5[%c0_25, %c0_26] : memref<1x1xf32, #tpu.memory_space<vmem>>, vector<1x1xf32>
      tpu.vector_store %arg5[%c0_25, %c0_26], %46 {strides = array<i32>} : memref<1x1xf32, #tpu.memory_space<vmem>>, vector<1x1xf32>,
      %cst_27 = arith.constant 0.000000e+00 : f32
      %48 = vector.broadcast %cst_27 : f32 to vector<1x1xf32>
      %c0_28 = arith.constant 0 : index
      %c0_29 = arith.constant 0 : index
      %49 = vector.load %arg6[%c0_28, %c0_29] : memref<1x1xf32, #tpu.memory_space<vmem>>, vector<1x1xf32>
      tpu.vector_store %arg6[%c0_28, %c0_29], %48 {strides = array<i32>} : memref<1x1xf32, #tpu.memory_space<vmem>>, vector<1x1xf32>,
    } else {
    }
    %c0 = arith.constant 0 : index
    %c0_1 = arith.constant 0 : index
    %3 = vector.load %arg1[%c0, %c0_1] : memref<8x4xf32, #tpu.memory_space<vmem>>, vector<8x4xf32>
    %c0_2 = arith.constant 0 : index
    %c0_3 = arith.constant 0 : index
    %4 = vector.load %arg2[%c0_2, %c0_3] : memref<8x1xi32, #tpu.memory_space<vmem>>, vector<8x1xi32>
    %c0_4 = arith.constant 0 : index
    %c0_5 = arith.constant 0 : index
    %5 = vector.load %arg3[%c0_4, %c0_5] : memref<8x1xf32, #tpu.memory_space<vmem>>, vector<8x1xf32>
    %6 = tpu.iota {dimensions = array<i32: 0>} : vector<8x1xi32>
    %c8_i32 = arith.constant 8 : i32
    %7 = arith.muli %arg0, %c8_i32 : i32
    %8 = vector.broadcast %7 : i32 to vector<8x1xi32>
    %9 = arith.addi %8, %6 : vector<8x1xi32>
    %c8_i32_6 = arith.constant 8 : i32
    %10 = vector.broadcast %c8_i32_6 : i32 to vector<8x1xi32>
    %11 = arith.cmpi slt, %9, %10 : vector<8x1xi32>
    %12 = tpu.iota {dimensions = array<i32: 1>} : vector<8x4xi32>
    %13 = vector.broadcast %4 : vector<8x1xi32> to vector<8x4xi32>
    %14 = arith.cmpi eq, %12, %13 : vector<8x4xi32>
    %cst = arith.constant 0.000000e+00 : f32
    %15 = vector.broadcast %cst : f32 to vector<8x4xf32>
    %16 = arith.select %14, %3, %15 : vector<8x4xi1>, vector<8x4xf32>
    %cst_7 = arith.constant dense<0.000000e+00> : vector<8xf32>
    %17 = vector.multi_reduction <add>, %16, %cst_7 [1] : vector<8x4xf32> to vector<8xf32>
    %18 = vector.shape_cast %17 : vector<8xf32> to vector<8x1xf32>
    %cst_8 = arith.constant dense<0xFF800000> : vector<8xf32>
    %19 = vector.multi_reduction <maximumf>, %3, %cst_8 [1] : vector<8x4xf32> to vector<8xf32>
    %20 = vector.shape_cast %19 : vector<8xf32> to vector<8x1xf32>
    %21 = vector.broadcast %20 : vector<8x1xf32> to vector<8x4xf32>
    %22 = arith.subf %3, %21 : vector<8x4xf32>
    %23 = math.exp %22 : vector<8x4xf32>
    %cst_9 = arith.constant dense<0.000000e+00> : vector<8xf32>
    %24 = vector.multi_reduction <add>, %23, %cst_9 [1] : vector<8x4xf32> to vector<8xf32>
    %25 = vector.shape_cast %24 : vector<8xf32> to vector<8x1xf32>
    %26 = math.log %25 : vector<8x1xf32>
    %27 = arith.addf %20, %26 : vector<8x1xf32>
    %28 = arith.subf %27, %18 : vector<8x1xf32>
    %cst_10 = arith.constant 0.000000e+00 : f32
    %29 = vector.broadcast %cst_10 : f32 to vector<8x1xf32>
    %30 = arith.select %11, %28, %29 : vector<8x1xi1>, vector<8x1xf32>
    %cst_11 = arith.constant 0.000000e+00 : f32
    %31 = vector.broadcast %cst_11 : f32 to vector<8x1xf32>
    %32 = arith.select %11, %5, %31 : vector<8x1xi1>, vector<8x1xf32>
    %c0_12 = arith.constant 0 : index
    %c0_13 = arith.constant 0 : index
    %33 = vector.load %arg5[%c0_12, %c0_13] : memref<1x1xf32, #tpu.memory_space<vmem>>, vector<1x1xf32>
    %cst_14 = arith.constant dense<0.000000e+00> : vector<1xf32>
    %34 = vector.multi_reduction <add>, %30, %cst_14 [0] : vector<8x1xf32> to vector<1xf32>
    %35 = vector.shape_cast %34 : vector<1xf32> to vector<1x1xf32>
    %36 = arith.addf %33, %35 : vector<1x1xf32>
    %c0_15 = arith.constant 0 : index
    %c0_16 = arith.constant 0 : index
    %37 = vector.load %arg5[%c0_15, %c0_16] : memref<1x1xf32, #tpu.memory_space<vmem>>, vector<1x1xf32>
    tpu.vector_store %arg5[%c0_15, %c0_16], %36 {strides = array<i32>} : memref<1x1xf32, #tpu.memory_space<vmem>>, vector<1x1xf32>,
    %c0_17 = arith.constant 0 : index
    %c0_18 = arith.constant 0 : index
    %38 = vector.load %arg6[%c0_17, %c0_18] : memref<1x1xf32, #tpu.memory_space<vmem>>, vector<1x1xf32>
    %cst_19 = arith.constant dense<0.000000e+00> : vector<1xf32>
    %39 = vector.multi_reduction <add>, %32, %cst_19 [0] : vector<8x1xf32> to vector<1xf32>
    %40 = vector.shape_cast %39 : vector<1xf32> to vector<1x1xf32>
    %41 = arith.addf %38, %40 : vector<1x1xf32>
    %c0_20 = arith.constant 0 : index
    %c0_21 = arith.constant 0 : index
    %42 = vector.load %arg6[%c0_20, %c0_21] : memref<1x1xf32, #tpu.memory_space<vmem>>, vector<1x1xf32>
    tpu.vector_store %arg6[%c0_20, %c0_21], %41 {strides = array<i32>} : memref<1x1xf32, #tpu.memory_space<vmem>>, vector<1x1xf32>,
    %c0_i32_22 = arith.constant 0 : i32
    %43 = arith.cmpi eq, %arg0, %c0_i32_22 : i32
    %44 = arith.extui %43 : i1 to i32
    %c0_i32_23 = arith.constant 0 : i32
    %45 = arith.cmpi ne, %44, %c0_i32_23 : i32
    scf.if %45 {
      %c0_24 = arith.constant 0 : index
      %c0_25 = arith.constant 0 : index
      %46 = vector.load %arg5[%c0_24, %c0_25] : memref<1x1xf32, #tpu.memory_space<vmem>>, vector<1x1xf32>
      %cst_26 = arith.constant 1.250000e-01 : f32
      %47 = vector.broadcast %cst_26 : f32 to vector<1x1xf32>
      %48 = arith.mulf %46, %47 : vector<1x1xf32>
      %c0_27 = arith.constant 0 : index
      %c0_28 = arith.constant 0 : index
      %49 = vector.load %arg6[%c0_27, %c0_28] : memref<1x1xf32, #tpu.memory_space<vmem>>, vector<1x1xf32>
      %cst_29 = arith.constant 1.250000e-01 : f32
      %50 = vector.broadcast %cst_29 : f32 to vector<1x1xf32>
      %51 = arith.mulf %49, %50 : vector<1x1xf32>
      %cst_30 = arith.constant 0.000000e+00 : f32
      %52 = vector.broadcast %cst_30 : f32 to vector<1x1xf32>
      %53 = arith.subf %52, %48 : vector<1x1xf32>
      %54 = math.exp %53 : vector<1x1xf32>
      %cst_31 = arith.constant 1.000000e+00 : f32
      %55 = vector.broadcast %cst_31 : f32 to vector<1x1xf32>
      %56 = arith.subf %55, %54 : vector<1x1xf32>
      %cst_32 = arith.constant 1.000000e+00 : f32
      %57 = vector.broadcast %cst_32 : f32 to vector<1x1xf32>
      %58 = arith.mulf %57, %56 : vector<1x1xf32>
      %59 = arith.mulf %58, %56 : vector<1x1xf32>
      %60 = arith.mulf %51, %59 : vector<1x1xf32>
      %61 = arith.mulf %60, %48 : vector<1x1xf32>
      %c0_33 = arith.constant 0 : index
      %c0_34 = arith.constant 0 : index
      %62 = vector.load %arg4[%c0_33, %c0_34] : memref<1x1xf32, #tpu.memory_space<vmem>>, vector<1x1xf32>
      tpu.vector_store %arg4[%c0_33, %c0_34], %61 {strides = array<i32>} : memref<1x1xf32, #tpu.memory_space<vmem>>, vector<1x1xf32>,
    } else {
    }
    return
  }
  func.func @transform_0(%arg0: i32) -> (i32, i32) {
    %c0_i32 = arith.constant 0 : i32
    %c0_i32_0 = arith.constant 0 : i32
    return %arg0, %c0_i32 : i32, i32
  }
  func.func @transform_1(%arg0: i32) -> (i32, i32) {
    %c0_i32 = arith.constant 0 : i32
    %c0_i32_0 = arith.constant 0 : i32
    return %arg0, %c0_i32 : i32, i32
  }
  func.func @transform_2(%arg0: i32) -> (i32, i32) {
    %c0_i32 = arith.constant 0 : i32
    %c0_i32_0 = arith.constant 0 : i32
    return %arg0, %c0_i32 : i32, i32
  }
  func.func @transform_3(%arg0: i32) -> (i32, i32) {
    %c0_i32 = arith.constant 0 : i32
    %c0_i32_0 = arith.constant 0 : i32
    %c0_i32_1 = arith.constant 0 : i32
    return %c0_i32, %c0_i32_0 : i32, i32
  }
}

</mosaic_0001>

<bundles_post_ra>
// kernel: tpu_custom_call.1
= control target key start
LH: loop header
LB: loop body
LE: loop exit
PB: predicated region body
PF: predicated region fallthrough
CT: control target
= control target key end

     0   :  { %vm38_vm0 = vcmask 31744   ;;  %s193_s0 = inlined_call_operand.vmem [shape: f32[8,4], index: 0, kind: input, shape index: {}]   ;;  %s194_s1 = inlined_call_operand.vmem [shape: s32[8,1], index: 1, kind: input, shape index: {}]   ;;  %s195_s2 = inlined_call_operand.vmem [shape: f32[8,1], index: 2, kind: input, shape index: {}]   ;;  %s196_s3 = inlined_call_operand.hbm [shape: f32[1,1], index: 3, kind: output, shape index: {}]  }
   0x1   :  { %v22_v0 = vld [vmem:[%s193_s0] sm:$0xff] }
   0x2   :  { %8 = vsyncpa [#allocation5], 0  ;;  %v42_v1 = vsel %vm38_vm0, %v22_v0, -inf  ;;  %v141_v2 = vmov 0   ;;  %v23_v3 = vld [vmem:[%s194_s1] sm:$0xff]  ;;  %v31_v7 = vlaneseq  ;;  %vm19_vm2 = vcmask 0  }
   0x3   :  { %110 = vset.pattern.permute.xlu0 %v141_v2  ;;  %v142_v14 = vmov 0.0   ;;  %v24_v15 = vld [vmem:[%s195_s2] sm:$0xff]  ;;  %vm68_vm3 = vcmask 7168   ;;  %s143_s2 = smov [#allocation4]  }
   0x4   :  { %43 = vmax.xlane.f32.xlu0 %v42_v1  ;;  %v32_v8 = vand.u32 127, %v31_v7  ;;  %20 = vst.msk [vmem:[#allocation2] sm:$0x1] %vm19_vm2, %v142_v14  ;;  %21 = vst.msk [vmem:[#allocation3] sm:$0x1] %vm19_vm2, %v142_v14  ;;  %v69_v16 = vsel %vm68_vm3, %v24_v15, 0.0 }
   0x5   :  { %v70_v17 = vrot.slane %v69_v16, 4  ;;  %s99_s16 = sshll.u32 %s143_s2, 4  ;;  %s100_s16 = int_to_ptr.vmem [resolvable:$true] %s99_s16 }
   0x6   :  { %s117_s17 = scalar_lea.vmem %s100_s16, 16  ;;  %s121_s18 = scalar_lea.vmem %s100_s16, 32 }
   0x7   :  { %v71_v18 = vadd.f32 %v70_v17, %v69_v16  ;;  %p118_p0 = scmp.ne.s32.totalorder %s100_s16, %s117_s17  ;;  %p122_p1 = scmp.lt.s32.totalorder %s100_s16, %s100_s16 }
   0x8   :  { %p123_p2 = scmp.lt.s32.totalorder %s121_s18, %s117_s17 }
   0x9   :  { %v72_v19 = vrot.slane %v71_v18, 2 }
   0xa   :  { %p124_p3 = por %p123_p2, %p122_p1 }
   0xb   :  { %v73_v20 = vadd.f32 %v72_v19, %v71_v18  ;;  %v67_v22 = vld [vmem:[#allocation3] sm:$0x1]  ;;  %v57_v36 = vld [vmem:[#allocation2] sm:$0x1] }
   0xc   :  { %p125_p4 = pnand %p124_p3, %p118_p0 }
   0xd   :  { %v74_v21 = vrot.slane %v73_v20, 1 }
   0xf   :  { %v75_v23 = vadd.f32 %v74_v21, %v73_v20 }
  0x11   :  { %v76_v24 = vadd.f32 %v75_v23, %v67_v22 }
  0x13   :  { %77 = vst.msk [vmem:[#allocation3] sm:$0x1] %vm19_vm2, %v76_v24 }
  0x1a   :  { %34 = vperm.xlu0 %110, %v23_v3   ;;  %v83_v43 = vld [vmem:[#allocation3] sm:$0x1] }
  0x1b   :  { %v84_v45 = vmul.f32 0.125, %v83_v43 }
  0x91   :  { %v44_v4 = vpop.xlane.xlu0 %43 }
  0x92   :  { %v45_v5 = vsub.f32 %v22_v0, %v44_v4 }
  0x94   :  { %v46_v6 = vmul.f32 1.442695, %v45_v5 }
  0x96   :  { %111 = vpow2.f32 %v46_v6 }
  0x99   :  { %v35_v9 = vpop.permute.xlu0 %34 }
  0x9a   :  { %vm36_vm1 = vcmp.eq.s32.totalorder %v32_v8, %v35_v9 }
  0x9b   :  { %v37_v11 = vsel %vm36_vm1, %v22_v0, 0.0 }
  0x9c   :  { %v39_v13 = vsel %vm38_vm0, %v37_v11, 0.0 }
  0xa0   :  { %v112_v10 = vpop.eup %111 }
  0xa1   :  { %v48_v12 = vsel %vm38_vm0, %v112_v10, 0.0 }
  0xa2   :  { %49 = vadd.xlane.f32.xlu1 %v48_v12 }
  0xa6   :  { %40 = vadd.xlane.f32.xlu1 %v39_v13 }
 0x12f   :  { %v50_v25 = vpop.xlane.xlu1 %49 }
 0x130   :  { %113 = vlog2.f32 %v50_v25 }
 0x133   :  { %v41_v28 = vpop.xlane.xlu1 %40 }
 0x13a   :  { %v114_v26 = vpop.eup %113 }
 0x13b   :  { %v52_v27 = vmul.f32 0.6931472, %v114_v26 }
 0x13d   :  { %v53_v29 = vadd.f32 %v52_v27, %v44_v4 }
 0x13f   :  { %v54_v30 = vsub.f32 %v53_v29, %v41_v28 }
 0x141   :  { %v58_v31 = vrot.slane %v54_v30, 4 }
 0x143   :  { %v59_v32 = vadd.f32 %v58_v31, %v54_v30 }
 0x145   :  { %v60_v33 = vrot.slane %v59_v32, 2 }
 0x147   :  { %v61_v34 = vadd.f32 %v60_v33, %v59_v32 }
 0x149   :  { %v62_v35 = vrot.slane %v61_v34, 1 }
 0x14b   :  { %v63_v37 = vadd.f32 %v62_v35, %v61_v34 }
 0x14d   :  { %v64_v38 = vadd.f32 %v63_v37, %v57_v36 }
 0x14f   :  { %66 = vst.msk [vmem:[#allocation2] sm:$0x1] %vm19_vm2, %v64_v38 }
 0x156   :  { %v81_v39 = vld [vmem:[#allocation2] sm:$0x1] }
 0x157   :  { %v82_v40 = vmul.f32 0.125, %v81_v39 }
 0x159   :  { %v85_v41 = vsub.f32 0.0, %v82_v40 }
 0x15b   :  { %v86_v42 = vmul.f32 1.442695, %v85_v41 }
 0x15d   :  { %115 = vpow2.f32 %v86_v42 }
 0x167   :  { %v116_v44 = vpop.eup %115 }
 0x168   :  { %v88_v46 = vsub.f32 1.0, %v116_v44 }
 0x16a   :  { %v89_v47 = vmul.f32 %v88_v46, %v88_v46 }
 0x16c   :  { %v90_v48 = vmul.f32 %v89_v47, %v84_v45 }
 0x16e   :  { %v91_v49 = vmul.f32 %v90_v48, %v82_v40 }
 0x170   :  { %92 = vst.msk [vmem:[#allocation4] sm:$0x1] %vm19_vm2, %v91_v49 }
 0x171   :  { %128 = shalt.err (!%p125_p4)
}
 0x172   :  { %s129_s21 = scalar_lea.hbm %s196_s3, 16 }
 0x173   :  { %p130_p5 = scmp.ne.s32.totalorder %s196_s3, %s129_s21  ;;  %p133_p6 = scmp.lt.u32.totalorder %s129_s21, %s196_s3 }
 0x175   :  { %p135_p7 = pnand %p133_p6, %p130_p5 }
 0x177   :  { %138 = shalt.err (!%p135_p7)
}
 0x178   :  { %102 = dma.vmem_to_hbm [thread:$0]  %s100_s16, 16, %s196_s3, [#allocation5]  }
 0x179   :  { %139 = dma.done.wait [#allocation5], 16  }
 0x17a   :  { %140 = vsyncadd [#allocation5], 4294967280 }
 0x17b   :  { %106 = vsyncpa [#allocation5], 1 }

</bundles_post_ra>
